<compile_context>
chip_gen: v5e
topology: v5e:2x2
jax: 0.10.0
libtpu: 0.0.40
codegen_flags: <defaults>
</compile_context>

<pallas_src>
import functools

import jax
import jax.numpy as jnp
from jax.experimental import pallas as pl
from jax.experimental.pallas import tpu as pltpu


# ---------------------------------------------------------------------------
# Pass 1: tiled global average pool over the spatial (lane) axis.
# ---------------------------------------------------------------------------
def _pool_kernel(bb_ref, ev_ref, pbb_ref, pev_ref, acc_bb, acc_ev, *, inv_hw):
    # bb_ref/ev_ref: [1, C, TILE_HW]   pbb_ref/pev_ref: [1, C, 1] (f32)
    h = pl.program_id(1)

    @pl.when(h == 0)
    def _():
        acc_bb[...] = jnp.zeros_like(acc_bb)
        acc_ev[...] = jnp.zeros_like(acc_ev)

    # Accumulate partial sums in f32 (precision-safe for bf16 inputs).
    acc_bb[...] += jnp.sum(bb_ref[...].astype(jnp.float32), axis=-1, keepdims=True)
    acc_ev[...] += jnp.sum(ev_ref[...].astype(jnp.float32), axis=-1, keepdims=True)

    @pl.when(h == pl.num_programs(1) - 1)
    def _():
        pbb_ref[...] = acc_bb[...] * inv_hw
        pev_ref[...] = acc_ev[...] * inv_hw


# ---------------------------------------------------------------------------
# Pass 2: batched gate MLPs + fold gate & residual mix into one per-channel
#         scale.  Lane-dense shapes: [B,C] @ [C,Cr] -> [B,Cr] @ [Cr,C] -> [B,C].
# ---------------------------------------------------------------------------
def _gate_scale_kernel(pbb_ref, pev_ref,
                       w1e_ref, b1e_ref, w2e_ref, b2e_ref,
                       w1b_ref, b1b_ref, w2b_ref, b2b_ref,
                       scale_bb_ref, scale_ev_ref,
                       *, backbone_weight, event_weight):
    pooled_bb = pbb_ref[...]  # [B, C] f32
    pooled_ev = pev_ref[...]  # [B, C] f32

    # gate_event: SE gate computed FROM backbone, applied to event.
    h_e = jnp.dot(pooled_bb, w1e_ref[...],
                  preferred_element_type=jnp.float32) + b1e_ref[...]   # [B, Cr]
    h_e = jnp.maximum(h_e, 0.0)
    g_e = jax.nn.sigmoid(jnp.dot(h_e, w2e_ref[...],
                                 preferred_element_type=jnp.float32) + b2e_ref[...])  # [B, C]

    # gate_backbone: SE gate computed FROM event, applied to backbone.
    h_b = jnp.dot(pooled_ev, w1b_ref[...],
                  preferred_element_type=jnp.float32) + b1b_ref[...]   # [B, Cr]
    h_b = jnp.maximum(h_b, 0.0)
    g_b = jax.nn.sigmoid(jnp.dot(h_b, w2b_ref[...],
                                 preferred_element_type=jnp.float32) + b2b_ref[...])  # [B, C]

    bw = jnp.float32(backbone_weight)
    ew = jnp.float32(event_weight)
    # Folded scale: out = x * (w*gate + (1-w))
    scale_bb_ref[...] = bw * g_b + (1.0 - bw)
    scale_ev_ref[...] = ew * g_e + (1.0 - ew)


# ---------------------------------------------------------------------------
# Pass 3: tiled elementwise apply — a single multiply per output element.
# ---------------------------------------------------------------------------
def _apply_kernel(bb_ref, ev_ref, sbb_ref, sev_ref, out_bb_ref, out_ev_ref):
    # bb_ref/ev_ref: [1, C, TILE_HW]; sbb_ref/sev_ref: [1, C, 1] (f32).
    out_bb_ref[...] = (bb_ref[...] * sbb_ref[...]).astype(out_bb_ref.dtype)
    out_ev_ref[...] = (ev_ref[...] * sev_ref[...]).astype(out_ev_ref.dtype)


# ---------------------------------------------------------------------------
# Wrapper
# ---------------------------------------------------------------------------
def _pick_hw_tile(hw, c, itemsize, vmem_budget_bytes=8 * 1024 * 1024):
    """Largest multiple of 128 dividing hw such that the apply kernel's
    double-buffered working set (~ 2 bufs * (2 in + 2 out) * c * tile * itemsize)
    stays inside a conservative VMEM budget (safe on v5e/v6e/v7x defaults)."""
    max_tile = max(128, vmem_budget_bytes // (8 * c * itemsize))
    if hw <= max_tile:
        return hw
    if hw % 128 != 0:
        # TODO(synk): pad HW to a multiple of 128 instead of a full-extent block.
        return hw
    best = 128
    cand = 256
    while cand <= min(hw, max_tile):
        if hw % cand == 0:
            best = cand
        cand += 128
    return best


def cross_feature_gating(
    combined_backbone,  # [B, C, H, W]
    combined_event,     # [B, C, H, W]
    params,             # dict of gate parameters (see init_params)
    backbone_weight: float = 0.8,
    event_weight: float = 0.4,
    hw_tile: int | None = None,
):
    B, C, H, W = combined_backbone.shape
    HW = H * W
    Cr = params["w1_event"].shape[0]
    dtype = combined_backbone.dtype

    bb = combined_backbone.reshape(B, C, HW)
    ev = combined_event.reshape(B, C, HW)

    if hw_tile is None:
        hw_tile = _pick_hw_tile(HW, C, jnp.dtype(dtype).itemsize)
    assert HW % hw_tile == 0, "hw_tile must divide H*W"
    nh = HW // hw_tile

    feat_spec = pl.BlockSpec((1, C, hw_tile), lambda b, h: (b, 0, h))
    chan_spec = pl.BlockSpec((1, C, 1), lambda b, h: (b, 0, 0))

    # --- Pass 1: pooled channel means, tiled over HW -------------------------
    pooled_bb, pooled_ev = pl.pallas_call(
        functools.partial(_pool_kernel, inv_hw=1.0 / HW),
        out_shape=(
            jax.ShapeDtypeStruct((B, C, 1), jnp.float32),
            jax.ShapeDtypeStruct((B, C, 1), jnp.float32),
        ),
        grid_spec=pltpu.PrefetchScalarGridSpec(
            num_scalar_prefetch=0,
            grid=(B, nh),
            in_specs=[feat_spec, feat_spec],
            out_specs=[chan_spec, chan_spec],
            scratch_shapes=[
                pltpu.VMEM((1, C, 1), jnp.float32),
                pltpu.VMEM((1, C, 1), jnp.float32),
            ],
        ),
        compiler_params=pltpu.CompilerParams(
            dimension_semantics=("parallel", "arbitrary")),
    )(bb, ev)

    # --- Pass 2: batched gate MLPs -> per-channel scales ----------------------
    # Pre-transpose weights so the MLP is lane-dense: [B,C] @ [C,Cr] @ [Cr,C].
    w1Te = params["w1_event"].T        # [C, Cr]
    w2Te = params["w2_event"].T        # [Cr, C]
    w1Tb = params["w1_backbone"].T     # [C, Cr]
    w2Tb = params["w2_backbone"].T     # [Cr, C]
    b1e = params["b1_event"].reshape(1, Cr)
    b2e = params["b2_event"].reshape(1, C)
    b1b = params["b1_backbone"].reshape(1, Cr)
    b2b = params["b2_backbone"].reshape(1, C)

    scale_bb, scale_ev = pl.pallas_call(
        functools.partial(_gate_scale_kernel,
                          backbone_weight=backbone_weight,
                          event_weight=event_weight),
        out_shape=(
            jax.ShapeDtypeStruct((B, C), jnp.float32),
            jax.ShapeDtypeStruct((B, C), jnp.float32),
        ),
    )(pooled_bb.reshape(B, C), pooled_ev.reshape(B, C),
      w1Te, b1e, w2Te, b2e, w1Tb, b1b, w2Tb, b2b)

    # --- Pass 3: tiled elementwise apply (both grid axes parallel) ------------
    out_bb, out_ev = pl.pallas_call(
        _apply_kernel,
        out_shape=(
            jax.ShapeDtypeStruct((B, C, HW), dtype),
            jax.ShapeDtypeStruct((B, C, HW), combined_event.dtype),
        ),
        grid_spec=pltpu.PrefetchScalarGridSpec(
            num_scalar_prefetch=0,
            grid=(B, nh),
            in_specs=[feat_spec, feat_spec, chan_spec, chan_spec],
            out_specs=[feat_spec, feat_spec],
        ),
        compiler_params=pltpu.CompilerParams(
            dimension_semantics=("parallel", "parallel")),
    )(bb, ev, scale_bb.reshape(B, C, 1), scale_ev.reshape(B, C, 1))

    return out_bb.reshape(B, C, H, W), out_ev.reshape(B, C, H, W)


# ---------------------------------------------------------------------------
# Parameters & pure-JAX reference
# ---------------------------------------------------------------------------
def init_params(key, in_channels: int, reduction: int):
    """Deterministic synthetic parameters (shapes match the nn.Conv2d 1x1 layers)."""
    Cr = in_channels // reduction
    keys = jax.random.split(key, 8)
    scale1 = 1.0 / jnp.sqrt(in_channels)
    scale2 = 1.0 / jnp.sqrt(Cr)
    return {
        "w1_event":    jax.random.normal(keys[0], (Cr, in_channels), jnp.float32) * scale1,
        "b1_event":    jax.random.normal(keys[1], (Cr,), jnp.float32) * scale1,
        "w2_event":    jax.random.normal(keys[2], (in_channels, Cr), jnp.float32) * scale2,
        "b2_event":    jax.random.normal(keys[3], (in_channels,), jnp.float32) * scale2,
        "w1_backbone": jax.random.normal(keys[4], (Cr, in_channels), jnp.float32) * scale1,
        "b1_backbone": jax.random.normal(keys[5], (Cr,), jnp.float32) * scale1,
        "w2_backbone": jax.random.normal(keys[6], (in_channels, Cr), jnp.float32) * scale2,
        "b2_backbone": jax.random.normal(keys[7], (in_channels,), jnp.float32) * scale2,
    }


def _reference(bb, ev, params, bw, ew):
    """Pure-JAX reference mirroring the PyTorch forward."""
    def se_gate(x, w1, b1, w2, b2):
        pooled = jnp.mean(x, axis=(2, 3))                        # [B, C]
        h = jnp.maximum(pooled @ w1.T + b1, 0.0)                 # [B, Cr]
        g = jax.nn.sigmoid(h @ w2.T + b2)                        # [B, C]
        return g[:, :, None, None]

    gate_event = se_gate(bb, params["w1_event"], params["b1_event"],
                         params["w2_event"], params["b2_event"])
    gated_ev = ev * gate_event
    gate_backbone = se_gate(ev, params["w1_backbone"], params["b1_backbone"],
                            params["w2_backbone"], params["b2_backbone"])
    gated_bb = bb * gate_backbone
    gated_bb = bw * gated_bb + (1 - bw) * bb
    gated_ev = ew * gated_ev + (1 - ew) * ev
    return gated_bb, gated_ev


if __name__ == "__main__":
    B, C, H, W = 2, 32, 16, 16
    reduction = 8
    backbone_weight, event_weight = 0.8, 0.4

    key = jax.random.PRNGKey(0)
    k_bb, k_ev, k_p = jax.random.split(key, 3)
    combined_backbone = jax.random.normal(k_bb, (B, C, H, W), jnp.float32)
    combined_event = jax.random.normal(k_ev, (B, C, H, W), jnp.float32)
    params = init_params(k_p, C, reduction)

    # Force multiple HW tiles (128-lane tiles over HW=256) to exercise the
    # tiled reduction / apply path even at this toy size.
    out_bb, out_ev = cross_feature_gating(
        combined_backbone, combined_event, params,
        backbone_weight=backbone_weight, event_weight=event_weight,
        hw_tile=128)
    jax.block_until_ready(out_bb)
    jax.block_until_ready(out_ev)

    ref_bb, ref_ev = _reference(combined_backbone, combined_event, params,
                                backbone_weight, event_weight)
    assert jnp.allclose(out_bb, ref_bb, atol=1e-5, rtol=1e-5)
    assert jnp.allclose(out_ev, ref_ev, atol=1e-5, rtol=1e-5)

    print("KERNEL_OK")
</pallas_src>

<mosaic_0001>
module attributes {stable_mosaic.version = 11 : i64} {
  func.func @_pool_kernel(%arg0: i32, %arg1: i32, %arg2: memref<1x32x128xf32, #tpu.memory_space<vmem>>, %arg3: memref<1x32x128xf32, #tpu.memory_space<vmem>>, %arg4: memref<1x32x1xf32, #tpu.memory_space<vmem>>, %arg5: memref<1x32x1xf32, #tpu.memory_space<vmem>>, %arg6: memref<1x32x1xf32, #tpu.memory_space<vmem>>, %arg7: memref<1x32x1xf32, #tpu.memory_space<vmem>>) attributes {dimension_semantics = [#tpu.dimension_semantics<parallel>, #tpu.dimension_semantics<arbitrary>], iteration_bounds = array<i64: 2, 2>, scalar_prefetch = 0 : i64, scratch_operands = 2 : i64, tpu.core_type = #tpu.core_type<tc>, window_params = [{transform_indices = @transform_0, window_bounds = array<i64: 1, 32, 128>}, {transform_indices = @transform_1, window_bounds = array<i64: 1, 32, 128>}, {transform_indices = @transform_2, window_bounds = array<i64: 1, 32, 1>}, {transform_indices = @transform_3, window_bounds = array<i64: 1, 32, 1>}]} {
    %c0_i32 = arith.constant 0 : i32
    %0 = arith.cmpi eq, %arg1, %c0_i32 : i32
    %1 = arith.extui %0 : i1 to i32
    %c0_i32_0 = arith.constant 0 : i32
    %2 = arith.cmpi ne, %1, %c0_i32_0 : i32
    scf.if %2 {
      %cst_20 = arith.constant 0.000000e+00 : f32
      %18 = vector.broadcast %cst_20 : f32 to vector<1x32x1xf32>
      %c0_21 = arith.constant 0 : index
      %c0_22 = arith.constant 0 : index
      %c0_23 = arith.constant 0 : index
      %19 = vector.load %arg6[%c0_21, %c0_22, %c0_23] : memref<1x32x1xf32, #tpu.memory_space<vmem>>, vector<1x32x1xf32>
      tpu.vector_store %arg6[%c0_21, %c0_22, %c0_23], %18 {strides = array<i32>} : memref<1x32x1xf32, #tpu.memory_space<vmem>>, vector<1x32x1xf32>,
      %cst_24 = arith.constant 0.000000e+00 : f32
      %20 = vector.broadcast %cst_24 : f32 to vector<1x32x1xf32>
      %c0_25 = arith.constant 0 : index
      %c0_26 = arith.constant 0 : index
      %c0_27 = arith.constant 0 : index
      %21 = vector.load %arg7[%c0_25, %c0_26, %c0_27] : memref<1x32x1xf32, #tpu.memory_space<vmem>>, vector<1x32x1xf32>
      tpu.vector_store %arg7[%c0_25, %c0_26, %c0_27], %20 {strides = array<i32>} : memref<1x32x1xf32, #tpu.memory_space<vmem>>, vector<1x32x1xf32>,
    } else {
    }
    %c0 = arith.constant 0 : index
    %c0_1 = arith.constant 0 : index
    %c0_2 = arith.constant 0 : index
    %3 = vector.load %arg6[%c0, %c0_1, %c0_2] : memref<1x32x1xf32, #tpu.memory_space<vmem>>, vector<1x32x1xf32>
    %c0_3 = arith.constant 0 : index
    %c0_4 = arith.constant 0 : index
    %c0_5 = arith.constant 0 : index
    %4 = vector.load %arg2[%c0_3, %c0_4, %c0_5] : memref<1x32x128xf32, #tpu.memory_space<vmem>>, vector<1x32x128xf32>
    %cst = arith.constant dense<0.000000e+00> : vector<1x32xf32>
    %5 = vector.multi_reduction <add>, %4, %cst [2] : vector<1x32x128xf32> to vector<1x32xf32>
    %6 = vector.shape_cast %5 : vector<1x32xf32> to vector<1x32x1xf32>
    %7 = arith.addf %3, %6 : vector<1x32x1xf32>
    %c0_6 = arith.constant 0 : index
    %c0_7 = arith.constant 0 : index
    %c0_8 = arith.constant 0 : index
    %8 = vector.load %arg6[%c0_6, %c0_7, %c0_8] : memref<1x32x1xf32, #tpu.memory_space<vmem>>, vector<1x32x1xf32>
    tpu.vector_store %arg6[%c0_6, %c0_7, %c0_8], %7 {strides = array<i32>} : memref<1x32x1xf32, #tpu.memory_space<vmem>>, vector<1x32x1xf32>,
    %c0_9 = arith.constant 0 : index
    %c0_10 = arith.constant 0 : index
    %c0_11 = arith.constant 0 : index
    %9 = vector.load %arg7[%c0_9, %c0_10, %c0_11] : memref<1x32x1xf32, #tpu.memory_space<vmem>>, vector<1x32x1xf32>
    %c0_12 = arith.constant 0 : index
    %c0_13 = arith.constant 0 : index
    %c0_14 = arith.constant 0 : index
    %10 = vector.load %arg3[%c0_12, %c0_13, %c0_14] : memref<1x32x128xf32, #tpu.memory_space<vmem>>, vector<1x32x128xf32>
    %cst_15 = arith.constant dense<0.000000e+00> : vector<1x32xf32>
    %11 = vector.multi_reduction <add>, %10, %cst_15 [2] : vector<1x32x128xf32> to vector<1x32xf32>
    %12 = vector.shape_cast %11 : vector<1x32xf32> to vector<1x32x1xf32>
    %13 = arith.addf %9, %12 : vector<1x32x1xf32>
    %c0_16 = arith.constant 0 : index
    %c0_17 = arith.constant 0 : index
    %c0_18 = arith.constant 0 : index
    %14 = vector.load %arg7[%c0_16, %c0_17, %c0_18] : memref<1x32x1xf32, #tpu.memory_space<vmem>>, vector<1x32x1xf32>
    tpu.vector_store %arg7[%c0_16, %c0_17, %c0_18], %13 {strides = array<i32>} : memref<1x32x1xf32, #tpu.memory_space<vmem>>, vector<1x32x1xf32>,
    %c1_i32 = arith.constant 1 : i32
    %15 = arith.cmpi eq, %arg1, %c1_i32 : i32
    %16 = arith.extui %15 : i1 to i32
    %c0_i32_19 = arith.constant 0 : i32
    %17 = arith.cmpi ne, %16, %c0_i32_19 : i32
    scf.if %17 {
      %c0_20 = arith.constant 0 : index
      %c0_21 = arith.constant 0 : index
      %c0_22 = arith.constant 0 : index
      %18 = vector.load %arg6[%c0_20, %c0_21, %c0_22] : memref<1x32x1xf32, #tpu.memory_space<vmem>>, vector<1x32x1xf32>
      %cst_23 = arith.constant 3.906250e-03 : f32
      %19 = vector.broadcast %cst_23 : f32 to vector<1x32x1xf32>
      %20 = arith.mulf %18, %19 : vector<1x32x1xf32>
      %c0_24 = arith.constant 0 : index
      %c0_25 = arith.constant 0 : index
      %c0_26 = arith.constant 0 : index
      %21 = vector.load %arg4[%c0_24, %c0_25, %c0_26] : memref<1x32x1xf32, #tpu.memory_space<vmem>>, vector<1x32x1xf32>
      tpu.vector_store %arg4[%c0_24, %c0_25, %c0_26], %20 {strides = array<i32>} : memref<1x32x1xf32, #tpu.memory_space<vmem>>, vector<1x32x1xf32>,
      %c0_27 = arith.constant 0 : index
      %c0_28 = arith.constant 0 : index
      %c0_29 = arith.constant 0 : index
      %22 = vector.load %arg7[%c0_27, %c0_28, %c0_29] : memref<1x32x1xf32, #tpu.memory_space<vmem>>, vector<1x32x1xf32>
      %cst_30 = arith.constant 3.906250e-03 : f32
      %23 = vector.broadcast %cst_30 : f32 to vector<1x32x1xf32>
      %24 = arith.mulf %22, %23 : vector<1x32x1xf32>
      %c0_31 = arith.constant 0 : index
      %c0_32 = arith.constant 0 : index
      %c0_33 = arith.constant 0 : index
      %25 = vector.load %arg5[%c0_31, %c0_32, %c0_33] : memref<1x32x1xf32, #tpu.memory_space<vmem>>, vector<1x32x1xf32>
      tpu.vector_store %arg5[%c0_31, %c0_32, %c0_33], %24 {strides = array<i32>} : memref<1x32x1xf32, #tpu.memory_space<vmem>>, vector<1x32x1xf32>,
    } else {
    }
    return
  }
  func.func @transform_0(%arg0: i32, %arg1: i32) -> (i32, i32, i32) {
    %c0_i32 = arith.constant 0 : i32
    %c0_i32_0 = arith.constant 0 : i32
    return %arg0, %c0_i32, %arg1 : i32, i32, i32
  }
  func.func @transform_1(%arg0: i32, %arg1: i32) -> (i32, i32, i32) {
    %c0_i32 = arith.constant 0 : i32
    %c0_i32_0 = arith.constant 0 : i32
    return %arg0, %c0_i32, %arg1 : i32, i32, i32
  }
  func.func @transform_2(%arg0: i32, %arg1: i32) -> (i32, i32, i32) {
    %c0_i32 = arith.constant 0 : i32
    %c0_i32_0 = arith.constant 0 : i32
    %c0_i32_1 = arith.constant 0 : i32
    return %arg0, %c0_i32, %c0_i32_0 : i32, i32, i32
  }
  func.func @transform_3(%arg0: i32, %arg1: i32) -> (i32, i32, i32) {
    %c0_i32 = arith.constant 0 : i32
    %c0_i32_0 = arith.constant 0 : i32
    %c0_i32_1 = arith.constant 0 : i32
    return %arg0, %c0_i32, %c0_i32_0 : i32, i32, i32
  }
}

</mosaic_0001>

<bundles_post_ra>
// kernel: tpu_custom_call.1
= control target key start
LH: loop header
LB: loop body
LE: loop exit
PB: predicated region body
PF: predicated region fallthrough
CT: control target
= control target key end

     0   :  { %s931_s0 = inlined_call_operand.hbm [shape: f32[2,32,256], index: 0, kind: input, shape index: {}]   ;;  %s932_s1 = inlined_call_operand.hbm [shape: f32[2,32,256], index: 1, kind: input, shape index: {}]   ;;  %s933_s2 = inlined_call_operand.vmem [shape: f32[2,32,1], index: 2, kind: output, shape index: {0}]   ;;  %s934_s3 = inlined_call_operand.vmem [shape: f32[2,32,1], index: 3, kind: output, shape index: {1}]  }
   0x1   :  { %937 = sst [smem:[#allocation12_spill]] %s931_s0 }
   0x2   :  { %9 = vsyncpa [#allocation5], 0 }
   0x3   :  { %11 = vsyncpa [#allocation5 + $0x1], 0 }
   0x4   :  { %12 = vsyncpa [#allocation7], 0 }
   0x5   :  { %14 = vsyncpa [#allocation7 + $0x1], 0  ;;  %s753_s12 = smov 0   ;;  %s755_s13 = smov 0  }
   0x6   :  { %s757_s14 = smov 0   ;;  %s759_s15 = smov 0  }
   0x7   :  { %s761_s16 = smov 0   ;;  %s763_s17 = smov 0  }
   0x8   :  { %s765_s18 = smov 0   ;;  %s767_s19 = smov 0  }
   0x9 LB: > { %s494_s20 = sadd.s32 4294967295, %s727_s19   ;;  %s29_s21 = sadd.s32 1, %s719_s17  ;;  %s727_s19 = sphi %s767_s19, %s20_s19   ;;  %s723_s18 = sphi %s765_s18, %s952_s18   ;;  %s719_s17 = sphi %s763_s17, %s951_s17   ;;  %s715_s16 = sphi %s761_s16, %s950_s16   ;;  %s711_s15 = sphi %s759_s15, %s949_s15   ;;  %s707_s14 = sphi %s757_s14, %s948_s14   ;;  %s703_s13 = sphi %s755_s13, %s947_s13   ;;  %s699_s12 = sphi %s753_s12, %s946_s12  }
   0xa   : > { %p30_p0 = scmp.ge.s32.totalorder %s29_s21, 2  ;;  %s32_s22 = sadd.s32 1, %s723_s18 }
   0xb   : > { %s41_s23 = sadd.s32 1, %s707_s14  ;;  %p48_p1 = scmp.ne.s32.totalorder %s707_s14, %s703_s13 }
   0xc   : > { %s954_s21 = smov (%p30_p0, %s29_s21), 0  ;;  %s956_s22 = smov (!%p30_p0, %s32_s22), %s723_s18 }
   0xd   : > { %938 = sst [smem:[#allocation10_spill]] %s954_s21  ;;  %s37_s24 = ssub.s32 %s719_s17, %s954_s21 }
   0xe   : > { %p49_p2 = scmp.eq.s32.totalorder %s727_s19, 0  ;;  %p34_p3 = scmp.ge.s32.totalorder %s956_s22, 2 }
   0xf   : > { %p54_p4 = scmp.ne.s32.totalorder %s703_s13, %s699_s12  ;;  %p55_p6 = scmp.eq.s32.totalorder %s494_s20, 0 }
  0x10   : > { %p804_p5 = por %p49_p2, %p48_p1  ;;  %s958_s22 = smov (%p34_p3, %s956_s22), 0 }
  0x11   : > { %940 = sst [smem:[#allocation11_spill]] %s958_s22  ;;  %p810_p7 = por %p55_p6, %p54_p4 }
  0x12   : > { %s36_s27 = ssub.s32 %s723_s18, %s958_s22  ;;  %p528_p8 = scmp.lt.s32.totalorder %s727_s19, 4 }
  0x13   : > { %s38_s28 = sor.u32 %s37_s24, %s36_s27  ;;  %s818_s29 = sand.u32 1, %s707_s14  }
  0x14   : > { %p39_p9 = scmp.eq.s32.totalorder %s38_s28, 0  ;;  %s498_s30 = sshll.u32 %s818_s29, 5 }
  0x15   : > { %s499_s4 = sshll.u32 %s723_s18, 3  ;;  %s162_s8 = scalar_lea.vmem [#allocation4], %s498_s30 }
  0x16   : > { %s823_s5 = scalar_select %p39_p9, %s707_s14, %s41_s23  }
  0x17   : > { %s166_s6 = sadd.s32 %s719_s17, %s499_s4  ;;  %s171_s9 = sshll.u32 %s162_s8, 4  ;;  %s172_s9 = int_to_ptr.vmem [resolvable:$true] %s171_s9 }
  0x18   : > { %s500_s7 = sshll.u32 %s166_s6, 3  ;;  %s942_s0 = sld [smem:[#allocation12_spill]] }
  0x19   : > { %p833_p10 = pnand %p528_p8, %p804_p5  ;;  %p504_p11 = scmp.ge.s32.totalorder %s727_s19, 1 }
  0x1a   : > { %s159_s23 = scalar_lea.sflag [#allocation5], %s818_s29  ;;  %s729_s27 = smov 256  }
  0x1b   : > { %s730_s28 = smov 128   ;;  %s731_s4 = smov 8  }
  0x1c   : > { %p202_p12 = scmp.lt.s32.totalorder %s727_s19, 5  ;;  %s191_s25 = scalar_lea.hbm %s932_s1, %s500_s7 }
  0x1d   : > { %s192_s10 = sshll.u32 %s191_s25, 4  ;;  %s185_s11 = scalar_lea.vmem [#allocation6], %s498_s30  ;;  %s193_s10 = int_to_ptr.hbm [resolvable:$true] %s192_s10 }
  0x1e   : > { %s168_s12 = scalar_lea.hbm %s942_s0, %s500_s7  ;;  %p203_p13 = pnand %p504_p11, %p202_p12 }
  0x1f   : > { %s169_s20 = sshll.u32 %s168_s12, 4  ;;  %s194_s12 = sshll.u32 %s185_s11, 4  ;;  %s170_s20 = int_to_ptr.hbm [resolvable:$true] %s169_s20  ;;  %s195_s12 = int_to_ptr.vmem [resolvable:$true] %s194_s12 }
  0x20   : > { %524 = dma.hbm_to_vmem [thread:$0]  (!%p833_p10), %s170_s20, 512, %s172_s9, %s159_s23, %s729_s27, %s730_s28, %s731_s4  }
  0x21   : > { %s182_s0 = scalar_lea.sflag [#allocation7], %s818_s29  ;;  %206 = sbr.rel (%p203_p13) target bundleno = 205 (0xcd), region = 28 }
  0x22   : > { %527 = dma.hbm_to_vmem [thread:$0]  (!%p833_p10), %s193_s10, 512, %s195_s12, %s182_s0, %s729_s27, %s730_s28, %s731_s4  }
  0x23   : > { %s208_s22 = sand.u32 (!%p203_p13), 1, %s703_s13  }
  0x24   : > { %s505_s21 = sshll.u32 (!%p203_p13), %s208_s22, 5  ;;  %s209_s9 = scalar_lea.sflag (!%p203_p13), [#allocation5], %s208_s22 }
  0x25   : > { %s849_s20 = scalar_lea.vmem (!%p203_p13), [#allocation4], %s505_s21 }
  0x26   : > { %690 = dma.done.wait (%p810_p7), %s209_s9, 512  }
  0x27   : > { %692 = vsyncadd (%p810_p7), %s209_s9, 4294966784  ;;  %s219_s30 = scalar_lea.sflag [#allocation7], %s208_s22  ;;  %s855_s7 = scalar_lea.vmem [#allocation6], %s505_s21 }
  0x28   : > { %694 = dma.done.wait (%p810_p7), %s219_s30, 512  }
  0x29   : > { %696 = vsyncadd (%p810_p7), %s219_s30, 4294966784  ;;  %p256_p0 = scmp.lt.s32.totalorder %s715_s16, 1  ;;  %p511_p1 = scmp.ne.s32.totalorder %s711_s15, 0 }
  0x2b   : > { %s960_s16 = smov (!%p256_p0, %s715_s16), 1  ;;  %269 = sbr.rel (%p511_p1) target bundleno = 57 (0x39), region = 40 }
  0x2c   : > { %s515_s0 = sshll.u32 %s960_s16, 5 }
  0x2d   : > { %s866_s23 = scalar_lea.vmem %s933_s2, %s515_s0  ;;  %s871_s21 = scalar_lea.vmem %s934_s3, %s515_s0 }
  0x30   : > { %vm270_vm0 = vcmask 7168   ;;  %v732_v0 = vmov 0.0  }
  0x31   : > { %271 = vst.msk [vmem:[#allocation2] sm:$0xff] %vm270_vm0, %v732_v0 }
  0x32   : > { %272 = vst.msk [vmem:[#allocation2 + $0x8] sm:$0xff] %vm270_vm0, %v732_v0 }
  0x33   : > { %273 = vst.msk [vmem:[#allocation2 + $0x10] sm:$0xff] %vm270_vm0, %v732_v0 }
  0x34   : > { %274 = vst.msk [vmem:[#allocation2 + $0x18] sm:$0xff] %vm270_vm0, %v732_v0 }
  0x35   : > { %275 = vst.msk [vmem:[#allocation3] sm:$0xff] %vm270_vm0, %v732_v0 }
  0x36   : > { %276 = vst.msk [vmem:[#allocation3 + $0x8] sm:$0xff] %vm270_vm0, %v732_v0 }
  0x37   : > { %277 = vst.msk [vmem:[#allocation3 + $0x10] sm:$0xff] %vm270_vm0, %v732_v0 }
  0x38   : > { %278 = vst.msk [vmem:[#allocation3 + $0x18] sm:$0xff] %vm270_vm0, %v732_v0 }
  0x39 PF: > { %v285_v1 = vld [vmem:[%s849_s20 + $0x10] sm:$0xff]  ;;  %v283_v2 = vld [vmem:[%s849_s20] sm:$0xff]  ;;  %v286_v4 = vld [vmem:[%s849_s20 + $0x18] sm:$0xff]  ;;  %vm299_vm1 = vcmask 7168   ;;  %p512_p2 = scmp.ne.s32.totalorder %s711_s15, 1 }
  0x3a   : > { %v308_v3 = vld [vmem:[%s855_s7] sm:$0xff]  ;;  %291 = vadd.xlane.f32.xlu1 %v285_v1  ;;  %287 = vadd.xlane.f32.xlu0 %v283_v2  ;;  %v284_v5 = vld [vmem:[%s849_s20 + $0x8] sm:$0xff]  ;;  %v311_v7 = vld [vmem:[%s855_s7 + $0x18] sm:$0xff] }
  0x3b   : > { %312 = vadd.xlane.f32.xlu2 %v308_v3  ;;  %v309_v6 = vld [vmem:[%s855_s7 + $0x8] sm:$0xff]  ;;  %v310_v8 = vld [vmem:[%s855_s7 + $0x10] sm:$0xff]  ;;  %v279_v10 = vld [vmem:[#allocation2] sm:$0xff] }
  0x3c   : > { %v281_v9 = vld [vmem:[#allocation2 + $0x10] sm:$0xff]  ;;  %v304_v11 = vld [vmem:[#allocation3] sm:$0xff]  ;;  %v282_v18 = vld [vmem:[#allocation2 + $0x18] sm:$0xff] }
  0x3d   : > { %v280_v19 = vld [vmem:[#allocation2 + $0x8] sm:$0xff] }
  0x3e   : > { %v305_v20 = vld [vmem:[#allocation3 + $0x8] sm:$0xff]  ;;  %v306_v28 = vld [vmem:[#allocation3 + $0x10] sm:$0xff] }
  0x3f   : > { %v307_v27 = vld [vmem:[#allocation3 + $0x18] sm:$0xff] }
  0x42   : > { %293 = vadd.xlane.f32.xlu1 %v286_v4  ;;  %289 = vadd.xlane.f32.xlu0 %v284_v5 }
  0x43   : > { %314 = vadd.xlane.f32.xlu2 %v309_v6 }
  0x4a   : > { %318 = vadd.xlane.f32.xlu1 %v311_v7  ;;  %316 = vadd.xlane.f32.xlu0 %v310_v8 }
  0xad   : > { %v292_v12 = vpop.xlane.xlu1 %291  ;;  %v288_v13 = vpop.xlane.xlu0 %287 }
  0xae   : > { %v297_v14 = vadd.f32 %v292_v12, %v281_v9  ;;  %v295_v15 = vadd.f32 %v288_v13, %v279_v10  ;;  %v313_v16 = vpop.xlane.xlu2 %312 }
  0xaf   : > { %v320_v17 = vadd.f32 %v313_v16, %v304_v11 }
  0xb0   : > { %302 = vst.msk [vmem:[#allocation2 + $0x10] sm:$0xff] %vm299_vm1, %v297_v14 }
  0xb1   : > { %300 = vst.msk [vmem:[#allocation2] sm:$0xff] %vm299_vm1, %v295_v15 }
  0xb2   : > { %324 = vst.msk [vmem:[#allocation3] sm:$0xff] %vm299_vm1, %v320_v17 }
  0xb5   : > { %v294_v21 = vpop.xlane.xlu1 %293  ;;  %v290_v22 = vpop.xlane.xlu0 %289 }
  0xb6   : > { %v298_v23 = vadd.f32 %v294_v21, %v282_v18  ;;  %v296_v24 = vadd.f32 %v290_v22, %v280_v19  ;;  %v315_v25 = vpop.xlane.xlu2 %314 }
  0xb7   : > { %v321_v26 = vadd.f32 %v315_v25, %v305_v20 }
  0xb8   : > { %303 = vst.msk [vmem:[#allocation2 + $0x18] sm:$0xff] %vm299_vm1, %v298_v23 }
  0xb9   : > { %301 = vst.msk [vmem:[#allocation2 + $0x8] sm:$0xff] %vm299_vm1, %v296_v24 }
  0xba   : > { %325 = vst.msk [vmem:[#allocation3 + $0x8] sm:$0xff] %vm299_vm1, %v321_v26 }
  0xbd   : > { %v319_v29 = vpop.xlane.xlu1 %318  ;;  %v317_v30 = vpop.xlane.xlu0 %316  ;;  %331 = sbr.rel (%p512_p2) target bundleno = 205 (0xcd), region = 44 }
  0xbe   : > { %v323_v31 = vadd.f32 %v319_v29, %v307_v27  ;;  %v322_v32 = vadd.f32 %v317_v30, %v306_v28 }
  0xc0   : > { %327 = vst.msk [vmem:[#allocation3 + $0x18] sm:$0xff] %vm299_vm1, %v323_v31 }
  0xc1   : > { %326 = vst.msk [vmem:[#allocation3 + $0x10] sm:$0xff] %vm299_vm1, %v322_v32 }
  0xc2   : > { %v332_v33 = vld [vmem:[#allocation2] sm:$0xff]  ;;  %v333_v34 = vld [vmem:[#allocation2 + $0x8] sm:$0xff]  ;;  %v334_v35 = vld [vmem:[#allocation2 + $0x10] sm:$0xff] }
  0xc3   : > { %v336_v36 = vmul.f32 0.00390625, %v332_v33  ;;  %v337_v37 = vmul.f32 0.00390625, %v333_v34  ;;  %v338_v38 = vmul.f32 0.00390625, %v334_v35  ;;  %v335_v39 = vld [vmem:[#allocation2 + $0x18] sm:$0xff]  ;;  %v344_v40 = vld [vmem:[#allocation3] sm:$0xff]  ;;  %v345_v41 = vld [vmem:[#allocation3 + $0x8] sm:$0xff] }
  0xc4   : > { %v339_v42 = vmul.f32 0.00390625, %v335_v39  ;;  %v348_v44 = vmul.f32 0.00390625, %v344_v40  ;;  %v349_v46 = vmul.f32 0.00390625, %v345_v41 }
  0xc5   : > { %340 = vst.msk [vmem:[%s866_s23] sm:$0xff] %vm299_vm1, %v336_v36 }
  0xc6   : > { %341 = vst.msk [vmem:[%s866_s23 + $0x8] sm:$0xff] %vm299_vm1, %v337_v37 }
  0xc7   : > { %v347_v45 = vld [vmem:[#allocation3 + $0x18] sm:$0xff]  ;;  %342 = vst.msk [vmem:[%s866_s23 + $0x10] sm:$0xff] %vm299_vm1, %v338_v38 }
  0xc8   : > { %v346_v43 = vld [vmem:[#allocation3 + $0x10] sm:$0xff]  ;;  %343 = vst.msk [vmem:[%s866_s23 + $0x18] sm:$0xff] %vm299_vm1, %v339_v42  ;;  %v351_v48 = vmul.f32 0.00390625, %v347_v45 }
  0xc9   : > { %v350_v47 = vmul.f32 0.00390625, %v346_v43  ;;  %352 = vst.msk [vmem:[%s871_s21] sm:$0xff] %vm299_vm1, %v348_v44 }
  0xca   : > { %353 = vst.msk [vmem:[%s871_s21 + $0x8] sm:$0xff] %vm299_vm1, %v349_v46 }
  0xcb   : > { %354 = vst.msk [vmem:[%s871_s21 + $0x10] sm:$0xff] %vm299_vm1, %v350_v47 }
  0xcc   : > { %355 = vst.msk [vmem:[%s871_s21 + $0x18] sm:$0xff] %vm299_vm1, %v351_v48 }
  0xcd PF: > { %s20_s19 = sadd.s32 1, %s727_s19   ;;  %s944_s22 = sld [smem:[#allocation10_spill]] }
  0xce   : > { %p17_p3 = scmp.ge.s32.totalorder %s20_s19, 6   ;;  %s945_s26 = sld [smem:[#allocation11_spill]] }
  0xcf   : > { %s946_s12 = smov %s703_s13  ;;  %s947_s13 = smov %s707_s14 }
  0xd0   : > { %s948_s14 = smov %s823_s5  ;;  %s949_s15 = smov %s719_s17 }
  0xd1   : > { %s950_s16 = smov %s723_s18  ;;  %19 = sbr.rel (!%p17_p3) target bundleno = 9 (0x9), region = 101 }
  0xd3   : > { %s951_s17 = smov %s944_s22 }
  0xd4   : > { %s952_s18 = smov %s945_s26 }
  0xd6   :  { %393 = vsyncpa [#allocation5], 1 }
  0xd7   :  { %395 = vsyncpa [#allocation5 + $0x1], 1 }
  0xd8   :  { %396 = vsyncpa [#allocation7], 1 }
  0xd9   :  { %398 = vsyncpa [#allocation7 + $0x1], 1 }

</bundles_post_ra>
